<compile_context>
chip_gen: v6e
topology: v6e:2x2x1
jax: 0.10.0
libtpu: 0.0.40
codegen_flags: <defaults>
</compile_context>

<pallas_src>
import functools
import math

import jax
import jax.numpy as jnp
import numpy as np
from jax.experimental import pallas as pl
from jax.experimental.pallas import tpu as pltpu


def _add_weights_kernel(x_ref, w_ref, o_ref, *, skolik: bool):
    x = x_ref[...].astype(jnp.float32)          # (tb, td) tile
    w = w_ref[...].astype(jnp.float32)          # (1, td), broadcast over batch
    if skolik:
        out = (x + 1.0) * 0.5 * w               # == ((x + 1) / 2) * w exactly
    else:
        out = x * w
    o_ref[...] = out.astype(o_ref.dtype)


def _tpu_vmem_capacity_bytes() -> int:
    try:
        return int(pltpu.get_tpu_info().vmem_capacity_bytes)
    except Exception:
        return 64 * 1024 * 1024                 # conservative (v7x-sized)


def _add_weights_pallas(x: jax.Array, w: jax.Array, skolik: bool) -> jax.Array:
    B, D = x.shape
    itemsize = x.dtype.itemsize

    # Generation-aware budgets: v5e/v6e have 128 MiB VMEM -> bigger tiles;
    # v7x has 64 MiB -> keep 8 MiB tiles / <=48 MiB scoped limit.
    vmem_cap = _tpu_vmem_capacity_bytes()
    if vmem_cap >= 96 * 1024 * 1024:            # v5e / v6e
        target_tile_bytes = 16 * 1024 * 1024
        vmem_cap_limit = 80 * 1024 * 1024
    else:                                       # v7x (or unknown -> safe)
        target_tile_bytes = 8 * 1024 * 1024
        vmem_cap_limit = 48 * 1024 * 1024

    # Sub-32-bit dtypes pack along sublanes; round tb to the packed multiple.
    sublane_mult = {4: 8, 2: 16, 1: 32}.get(itemsize, 8)

    # Feature-axis tiling only when even a minimal-height batch tile at full D
    # would exceed the per-tile budget (very wide D).
    if sublane_mult * D * itemsize > target_tile_bytes and D >= 256:
        td = (target_tile_bytes // (sublane_mult * itemsize)) // 128 * 128
        td = max(128, min(td, (D // 128) * 128))
    else:
        td = D

    # Batch tile: as tall as the budget allows, rounded to the sublane multiple,
    # or the full batch extent (always legal) when everything fits.
    tb = target_tile_bytes // max(1, td * itemsize)
    tb = (tb // sublane_mult) * sublane_mult
    tb = max(sublane_mult, tb)
    if tb >= B:
        tb = B

    grid = (pl.cdiv(B, tb), pl.cdiv(D, td))

    # VMEM budget: double-buffered x and out tiles + the resident/tiled weight,
    # plus headroom.  Capped per generation (<= 48 MiB on v7x).
    tile_bytes = tb * td * itemsize
    w_bytes = 2 * td * w.dtype.itemsize
    vmem_limit = int(min(vmem_cap_limit,
                         max(4 * 1024 * 1024,
                             2 * 2 * tile_bytes + w_bytes + (1 << 20))))

    kernel = functools.partial(_add_weights_kernel, skolik=skolik)
    return pl.pallas_call(
        kernel,
        out_shape=jax.ShapeDtypeStruct((B, D), x.dtype),
        grid_spec=pltpu.PrefetchScalarGridSpec(
            num_scalar_prefetch=0,
            grid=grid,
            in_specs=[
                pl.BlockSpec((tb, td), lambda i, j: (i, j)),   # x: tiled
                pl.BlockSpec((1, td), lambda i, j: (0, j)),    # w: follows D tile
            ],
            out_specs=pl.BlockSpec((tb, td), lambda i, j: (i, j)),
        ),
        compiler_params=pltpu.CompilerParams(
            dimension_semantics=("parallel", "parallel"),      # independent tiles
            vmem_limit_bytes=vmem_limit),
    )(x, w)


def add_weights_forward(inputs: jax.Array,
                        weights: jax.Array,
                        process_input: str = "None",
                        *,
                        force_pallas: bool = False) -> jax.Array:
    """Forward pass of add_weights: out = (maybe-rescaled inputs) * weights."""
    assert inputs.ndim == 2, "expected (batch, input_size) inputs"
    assert jnp.issubdtype(inputs.dtype, jnp.floating), "inputs must be floating point"
    B, D = inputs.shape

    # weights_type='same' gives a (1, 1) scalar parameter: broadcast it.
    if weights.shape == (1, 1) and D != 1:
        weights = jnp.broadcast_to(weights, (1, D))
    assert weights.shape == (1, D), f"bad weight shape {weights.shape}"

    skolik = process_input == "skolik"

    # Small-size bypass: a standalone pallas_call is pure launch overhead for
    # tiny tensors; let XLA fuse the elementwise op with its neighbors.
    if not force_pallas and B * D * inputs.dtype.itemsize < 512 * 1024:
        if skolik:
            out = ((inputs + 1.0) * 0.5) * weights
        else:
            out = inputs * weights
        return out.astype(inputs.dtype)

    orig_shape = (B, D)

    # Lane-dense repack via L = lcm(D, 128): a last dim that isn't a multiple
    # of 128 wastes lanes and forces masked vst.msk stores.  If the rows fold
    # evenly onto L lanes this is a pure layout change (weight tiled to match).
    x = inputs
    w = weights
    if D % 128 != 0 and D > 0:
        L = (D * 128) // math.gcd(D, 128)
        if (B * D) % L == 0:
            reps = L // D
            x = inputs.reshape(B * D // L, L)
            w = jnp.tile(weights, (1, reps))

    out = _add_weights_pallas(x, w, skolik)
    return out.reshape(orig_shape)


def init_add_weights_params(key: jax.Array,
                            input_size: int,
                            weights_type: str = "unique",
                            sampling_type: str = "random") -> jax.Array:
    """Deterministic re-implementation of add_weights.__init__ parameter setup."""
    if weights_type == "unique":
        shape = (1, input_size)
    else:
        shape = (1, 1)  # scalar parameter, kept 2-D for the kernel
    if sampling_type == "random":
        w = jax.random.uniform(key, shape, dtype=jnp.float32,
                               minval=0.0, maxval=np.pi)
    elif sampling_type == "ones":
        w = jnp.ones(shape, dtype=jnp.float32)
    else:
        raise ValueError(sampling_type)
    return w


if __name__ == "__main__":
    key = jax.random.PRNGKey(0)
    k_w, k_x, k_x2, k_x3, k_x4, k_x5 = jax.random.split(key, 6)

    batch, input_size = 8, 32
    weights = init_add_weights_params(k_w, input_size,
                                      weights_type="unique",
                                      sampling_type="random")
    x = jax.random.normal(k_x, (batch, input_size), dtype=jnp.float32)

    # --- process_input='None', unique weights (lane-dense repack path) ---
    out = jax.block_until_ready(
        add_weights_forward(x, weights, "None", force_pallas=True))
    ref = x * weights
    np.testing.assert_allclose(np.asarray(out), np.asarray(ref),
                               rtol=1e-6, atol=1e-6)

    # --- process_input='skolik', unique weights ---
    out_sk = jax.block_until_ready(
        add_weights_forward(x, weights, "skolik", force_pallas=True))
    ref_sk = ((x + 1.0) / 2.0) * weights
    np.testing.assert_allclose(np.asarray(out_sk), np.asarray(ref_sk),
                               rtol=1e-6, atol=1e-6)

    # --- weights_type='same' (scalar parameter, broadcast over features) ---
    w_same = init_add_weights_params(k_w, input_size,
                                     weights_type="same",
                                     sampling_type="random")
    out_same = jax.block_until_ready(
        add_weights_forward(x, w_same, "None", force_pallas=True))
    ref_same = x * w_same
    np.testing.assert_allclose(np.asarray(out_same), np.asarray(ref_same),
                               rtol=1e-6, atol=1e-6)

    # --- already lane-dense (D multiple of 128, no repack) ---
    x2 = jax.random.normal(k_x2, (16, 128), dtype=jnp.float32)
    w2 = init_add_weights_params(k_w, 128, "unique", "ones")
    out2 = jax.block_until_ready(
        add_weights_forward(x2, w2, "skolik", force_pallas=True))
    ref2 = ((x2 + 1.0) / 2.0) * w2
    np.testing.assert_allclose(np.asarray(out2), np.asarray(ref2),
                               rtol=1e-6, atol=1e-6)

    # --- lcm(D,128) repack path (D=48 -> L=384) ---
    x3 = jax.random.normal(k_x3, (64, 48), dtype=jnp.float32)
    w3 = init_add_weights_params(k_w, 48, "unique", "random")
    out3 = jax.block_until_ready(
        add_weights_forward(x3, w3, "None", force_pallas=True))
    np.testing.assert_allclose(np.asarray(out3), np.asarray(x3 * w3),
                               rtol=1e-6, atol=1e-6)

    # --- non-repackable shape (masked-store fallback, still correct) ---
    x4 = jax.random.normal(k_x4, (7, 33), dtype=jnp.float32)
    w4 = init_add_weights_params(k_w, 33, "unique", "random")
    out4 = jax.block_until_ready(
        add_weights_forward(x4, w4, "skolik", force_pallas=True))
    np.testing.assert_allclose(np.asarray(out4),
                               np.asarray(((x4 + 1.0) / 2.0) * w4),
                               rtol=1e-6, atol=1e-6)

    # --- natural Pallas path (above the small-size bypass threshold) ---
    x5 = jax.random.normal(k_x5, (512, 384), dtype=jnp.float32)
    w5 = init_add_weights_params(k_w, 384, "unique", "random")
    out5 = jax.block_until_ready(add_weights_forward(x5, w5, "None"))
    np.testing.assert_allclose(np.asarray(out5), np.asarray(x5 * w5),
                               rtol=1e-6, atol=1e-6)

    # --- small-size bypass path (fused XLA elementwise) ---
    out_bp = jax.block_until_ready(add_weights_forward(x, weights, "None"))
    np.testing.assert_allclose(np.asarray(out_bp), np.asarray(ref),
                               rtol=1e-6, atol=1e-6)

    print("KERNEL_OK")
</pallas_src>

<mosaic_0001>
module attributes {stable_mosaic.version = 11 : i64} {
  func.func @_add_weights_kernel(%arg0: i32, %arg1: i32, %arg2: memref<2x128xf32, #tpu.memory_space<vmem>>, %arg3: memref<1x128xf32, #tpu.memory_space<vmem>>, %arg4: memref<2x128xf32, #tpu.memory_space<vmem>>) attributes {dimension_semantics = [#tpu.dimension_semantics<parallel>, #tpu.dimension_semantics<parallel>], iteration_bounds = array<i64: 1, 1>, scalar_prefetch = 0 : i64, scratch_operands = 0 : i64, tpu.core_type = #tpu.core_type<tc>, window_params = [{transform_indices = @transform_0, window_bounds = array<i64: 2, 128>}, {transform_indices = @transform_1, window_bounds = array<i64: 1, 128>}, {transform_indices = @transform_2, window_bounds = array<i64: 2, 128>}]} {
    %c0 = arith.constant 0 : index
    %c0_0 = arith.constant 0 : index
    %0 = vector.load %arg2[%c0, %c0_0] : memref<2x128xf32, #tpu.memory_space<vmem>>, vector<2x128xf32>
    %c0_1 = arith.constant 0 : index
    %c0_2 = arith.constant 0 : index
    %1 = vector.load %arg3[%c0_1, %c0_2] : memref<1x128xf32, #tpu.memory_space<vmem>>, vector<1x128xf32>
    %2 = vector.broadcast %1 : vector<1x128xf32> to vector<2x128xf32>
    %3 = arith.mulf %0, %2 : vector<2x128xf32>
    %c0_3 = arith.constant 0 : index
    %c0_4 = arith.constant 0 : index
    %4 = vector.load %arg4[%c0_3, %c0_4] : memref<2x128xf32, #tpu.memory_space<vmem>>, vector<2x128xf32>
    tpu.vector_store %arg4[%c0_3, %c0_4], %3 {strides = array<i32>} : memref<2x128xf32, #tpu.memory_space<vmem>>, vector<2x128xf32>,
    return
  }
  func.func @transform_0(%arg0: i32, %arg1: i32) -> (i32, i32) {
    %c0_i32 = arith.constant 0 : i32
    return %arg0, %arg1 : i32, i32
  }
  func.func @transform_1(%arg0: i32, %arg1: i32) -> (i32, i32) {
    %c0_i32 = arith.constant 0 : i32
    %c0_i32_0 = arith.constant 0 : i32
    return %c0_i32, %arg1 : i32, i32
  }
  func.func @transform_2(%arg0: i32, %arg1: i32) -> (i32, i32) {
    %c0_i32 = arith.constant 0 : i32
    return %arg0, %arg1 : i32, i32
  }
}

</mosaic_0001>

<bundles_post_ra>
// kernel: tpu_custom_call.1
= control target key start
LH: loop header
LB: loop body
LE: loop exit
PB: predicated region body
PF: predicated region fallthrough
CT: control target
= control target key end

     0   :  { %7 = vsyncpa [#allocation3], 0  ;;  %s122_s0 = inlined_call_operand.hbm [shape: f32[2,128], index: 0, kind: input, shape index: {}]   ;;  %s123_s1 = inlined_call_operand.vmem [shape: f32[1,128], index: 1, kind: input, shape index: {}]   ;;  %s124_s2 = inlined_call_operand.hbm [shape: f32[2,128], index: 2, kind: output, shape index: {}]  }
   0x1   :  { %8 = vsyncpa [#allocation4], 0  ;;  %s96_s9 = smov [#allocation2]  }
   0x2   :  { %s15_s10 = sshll.u32 %s96_s9, 4  ;;  %s16_s10 = int_to_ptr.vmem [resolvable:$true] %s15_s10 }
   0x3   :  { %s60_s11 = scalar_lea.vmem %s16_s10, 32  ;;  %p65_p1 = scmp.lt.s32.totalorder %s16_s10, %s16_s10 }
   0x4   :  { %p61_p0 = scmp.ne.s32.totalorder %s16_s10, %s60_s11  ;;  %p66_p2 = scmp.lt.s32.totalorder %s60_s11, %s60_s11 }
   0x6   :  { %p67_p3 = por %p66_p2, %p65_p1 }
   0x8   :  { %p68_p4 = pnand %p67_p3, %p61_p0 }
   0xa   :  { %71 = shalt.err (!%p68_p4)
}
   0xb   :  { %18 = dma.hbm_to_vmem [thread:$0]  %s122_s0, 32, %s16_s10, [#allocation3]  }
   0xc   :  { %92 = dma.done.wait [#allocation3], 32  }
   0xd   :  { %93 = vsyncadd [#allocation3], 4294967264  ;;  %s97_s14 = smov [#allocation5]   ;;  %v24_v0 = vld [vmem:[#allocation2] sm:$0x3] }
   0xe   :  { %s40_s15 = sshll.u32 %s97_s14, 4  ;;  %v49_v1 = vld [vmem:[%s123_s1] ss:$0 sm:$0xff]  ;;  %s41_s15 = int_to_ptr.vmem [resolvable:$true] %s40_s15 }
   0xf   :  { %v32_v2 = vmul.f32 %v49_v1, %v24_v0  ;;  %s72_s18 = scalar_lea.vmem %s41_s15, 32  ;;  %p77_p6 = scmp.lt.s32.totalorder %s41_s15, %s41_s15 }
  0x10   :  { %p73_p5 = scmp.ne.s32.totalorder %s41_s15, %s72_s18  ;;  %p78_p7 = scmp.lt.s32.totalorder %s72_s18, %s72_s18 }
  0x11   :  { %33 = vst [vmem:[#allocation5] sm:$0x3] %v32_v2 }
  0x12   :  { %p79_p8 = por %p78_p7, %p77_p6 }
  0x14   :  { %p80_p9 = pnand %p79_p8, %p73_p5 }
  0x16   :  { %83 = shalt.err (!%p80_p9)
}
  0x17   :  { %43 = dma.vmem_to_hbm [thread:$0]  %s41_s15, 32, %s124_s2, [#allocation4]  }
  0x18   :  { %94 = dma.done.wait [#allocation4], 32  }
  0x19   :  { %95 = vsyncadd [#allocation4], 4294967264 }
  0x1a   :  { %47 = vsyncpa [#allocation3], 1 }
  0x1b   :  { %48 = vsyncpa [#allocation4], 1 }

</bundles_post_ra>
